<compile_context>
chip_gen: v7x
topology: tpu7x:2x2x1
jax: 0.10.0
libtpu: 0.0.40
codegen_flags: <defaults>
</compile_context>

<pallas_src>
import functools

import jax
import jax.numpy as jnp
from jax.experimental import pallas as pl
from jax.experimental.pallas import tpu as pltpu

WINDOW_SIZES = (3, 4, 5)
NTAPS = max(WINDOW_SIZES)          # number of global taps after widest-window padding
PAD = NTAPS - 1                    # sequence padding on each side (widest window)
E_DIM = 300                        # embedding width is fixed by Conv2d kernel [ws, 300]
EPS = 1e-8                         # nn.CosineSimilarity default eps


def _cnn_text_kernel(lhs_ref, mask_ref, w_ref, b_ref, fcw_ref, fcb_ref,
                     cos_ref, feat_ref, *, seq_len, batch, num_filters):
    T = seq_len + NTAPS - 1        # uniform conv-output length (widest window's)

    # --- conv over all windows / taps / batch in ONE wide MXU matmul ---------
    # lhs: (B*T, NTAPS*E), w: (3F, NTAPS*E); contract the shared lane axis.
    conv = jax.lax.dot_general(lhs_ref[...], w_ref[...],
                               (((1,), (1,)), ((), ())),
                               preferred_element_type=jnp.float32)      # (B*T, 3F)
    # bias + ReLU, then zero rows that only exist because of the uniform T
    # (padding-only inputs, value == ReLU(bias)).  Multiplying by the 0/1 mask
    # preserves the max-pool because ReLU >= 0 and each window has >= 1 valid
    # row.  Mask is a precomputed constant -> a single vmul here.
    act = jnp.maximum(conv + b_ref[...], 0.0) * mask_ref[...]           # (B*T, 3F)

    # --- max-pool over the sequence axis, written directly into feature rows --
    for b in range(batch):                       # batch is tiny & static -> unrolled
        feat_ref[b:b + 1, :] = jnp.max(act[b * T:(b + 1) * T, :], axis=0,
                                       keepdims=True)

    # TODO(synk): nn.Dropout(0.5) is identity in eval mode; not applied here.
    feat = feat_ref[...]                                                # (B, 3F)
    logits = jnp.dot(feat, fcw_ref[...],
                     preferred_element_type=jnp.float32) + fcb_ref[...]  # (B, C)

    # Pairwise cosine similarity between logit rows (nn.CosineSimilarity(dim=0)).
    gram = jax.lax.dot_general(logits, logits, (((1,), (1,)), ((), ())),
                               preferred_element_type=jnp.float32)      # (B, B)
    norm = jnp.sqrt(jnp.sum(logits * logits, axis=1, keepdims=True))    # (B, 1)
    denom = jax.lax.dot_general(norm, norm, (((1,), (1,)), ((), ())),
                                preferred_element_type=jnp.float32)     # outer(norm, norm)
    cos_ref[...] = gram / jnp.maximum(denom, EPS)


def prepare_params(params):
    """One-time re-layout of weights into kernel-friendly form (not per-call)."""
    F = params["conv_w"][0].shape[0]
    C = params["fc_b"].shape[0]
    n_ws = len(WINDOW_SIZES)

    # Conv weights -> (3F, NTAPS*E): row wi*F+f, columns p*E..(p+1)*E hold
    # w_wi[f, p-(NTAPS-ws), :]; zero where window wi has no tap at global
    # position p.  Tap/E axis sits on lanes (lane-dense contraction).
    rows = []
    for wi, ws in enumerate(WINDOW_SIZES):
        w = params["conv_w"][wi].astype(jnp.float32)                   # (F, ws, E)
        lead = jnp.zeros((F, (NTAPS - ws) * E_DIM), jnp.float32)
        rows.append(jnp.concatenate([lead, w.reshape(F, ws * E_DIM)], axis=1))
    conv_w = jnp.concatenate(rows, axis=0)                             # (3F, NTAPS*E)
    conv_b = jnp.concatenate([b.astype(jnp.float32)
                              for b in params["conv_b"]]).reshape(1, n_ws * F)

    # PyTorch flattens (B, F, n_ws) row-major -> column index f*n_ws + wi; the
    # kernel builds features in order wi*F + f, so permute FC columns to match.
    fc_w = params["fc_w"].astype(jnp.float32)                          # (C, F*n_ws)
    fc_w = fc_w.reshape(C, F, n_ws).transpose(0, 2, 1).reshape(C, n_ws * F)
    return {
        "embedding": params["embedding"].astype(jnp.float32),
        "conv_w": conv_w,                                              # (3F, NTAPS*E)
        "conv_b": conv_b,                                              # (1, 3F)
        "fc_w": fc_w.T,                                                # (3F, C)
        "fc_b": params["fc_b"].astype(jnp.float32).reshape(1, C),      # (1, C)
    }
    # TODO(synk): optionally cast embedding/conv_w/fc_w to bf16 for v6e/v7x MXU
    # throughput (keep f32 accumulation); needs a looser tolerance than 1e-4.


@jax.jit
def cnn_text_classifier(tokens, prepared):
    emb_w = prepared["embedding"]
    B, S = tokens.shape
    F3 = prepared["conv_b"].shape[-1]
    F = F3 // len(WINDOW_SIZES)
    T = S + NTAPS - 1

    # Embedding gather + ONE widest-window padding + im2col (5 overlapping
    # slices concatenated on the lane axis).  All of this glue fuses under jit.
    emb = emb_w[tokens]                                                # (B, S, E)
    padded = jnp.pad(emb, ((0, 0), (PAD, PAD), (0, 0)))                # (B, S+2*PAD, E)
    lhs = jnp.concatenate([padded[:, p:p + T, :] for p in range(NTAPS)],
                          axis=-1).reshape(B * T, NTAPS * E_DIM)       # (B*T, 5E)

    # 0/1 validity mask per (row, filter-column): window wi is valid for
    # t < S + ws - 1.  Pure function of static shapes -> constant-folded by XLA.
    t_idx = jnp.arange(T, dtype=jnp.int32)[:, None]                    # (T, 1)
    ws_col = jnp.asarray(WINDOW_SIZES, jnp.int32)[
        jnp.arange(F3, dtype=jnp.int32)[None, :] // F]                 # (1, F3)
    mask = jnp.tile((t_idx < (S + ws_col - 1)).astype(jnp.float32),
                    (B, 1))                                            # (B*T, F3)

    kernel = functools.partial(_cnn_text_kernel, seq_len=S, batch=B,
                               num_filters=F)
    cos = pl.pallas_call(
        kernel,
        out_shape=jax.ShapeDtypeStruct((B, B), jnp.float32),
        in_specs=[pl.BlockSpec(memory_space=pltpu.MemorySpace.VMEM)] * 6,
        out_specs=pl.BlockSpec(memory_space=pltpu.MemorySpace.VMEM),
        scratch_shapes=[pltpu.VMEM((B, F3), jnp.float32)],
        # TODO(synk): if B or S grows, add a grid over B with per-batch
        # BlockSpecs and dimension_semantics=("parallel",) (v7x dual-TC).
    )(lhs, mask, prepared["conv_w"], prepared["conv_b"],
      prepared["fc_w"], prepared["fc_b"])

    # Drop the diagonal (cos(x, x) == 1) keeping torch's (i, j != i) ordering.
    j_idx = (jnp.arange(B - 1)[None, :]
             + (jnp.arange(B - 1)[None, :] >= jnp.arange(B)[:, None]).astype(jnp.int32))
    # TODO(synk): torch casts logits to float64; TPU has no native f64, kept f32.
    return jnp.take_along_axis(cos, j_idx, axis=1)                     # (B, B-1)


def reference(tokens, params):
    """Pure-JAX reference with identical math (for a sanity check)."""
    emb_w = params["embedding"]
    B, S = tokens.shape
    F = params["conv_w"][0].shape[0]
    emb = emb_w[tokens]
    pooled = []
    for ws, w, bias in zip(WINDOW_SIZES, params["conv_w"], params["conv_b"]):
        ep = jnp.pad(emb, ((0, 0), (ws - 1, ws - 1), (0, 0)))
        T = S + ws - 1
        conv = jnp.zeros((B, T, F), jnp.float32)
        for k in range(ws):
            conv = conv + jnp.einsum("bte,fe->btf", ep[:, k:k + T, :], w[:, k, :])
        conv = jnp.maximum(conv + bias[None, None, :], 0.0)
        pooled.append(jnp.max(conv, axis=1))                           # (B, F)
    feat = jnp.stack(pooled, axis=2).reshape(B, F * len(WINDOW_SIZES))
    logits = feat @ params["fc_w"].T + params["fc_b"]
    n = jnp.sqrt(jnp.sum(logits * logits, axis=1))
    cos = (logits @ logits.T) / jnp.maximum(n[:, None] * n[None, :], EPS)
    j_idx = (jnp.arange(B - 1)[None, :]
             + (jnp.arange(B - 1)[None, :] >= jnp.arange(B)[:, None]).astype(jnp.int32))
    return jnp.take_along_axis(cos, j_idx, axis=1)


if __name__ == "__main__":
    # Small deterministic setup: vocab=20, embed=300 (forced by conv width),
    # batch=2, seq=8, num_filters=8, num_classes=4.
    VOCAB, E, B, S, F, C = 20, E_DIM, 2, 8, 8, 4

    key = jax.random.PRNGKey(0)
    ks = jax.random.split(key, 10)
    params = {
        "embedding": jax.random.normal(ks[0], (VOCAB, E), jnp.float32) * 0.1,
        "conv_w": [jax.random.normal(ks[1 + i], (F, ws, E), jnp.float32) * 0.05
                   for i, ws in enumerate(WINDOW_SIZES)],
        "conv_b": [jax.random.normal(ks[4 + i], (F,), jnp.float32) * 0.1
                   for i in range(len(WINDOW_SIZES))],
        "fc_w": jax.random.normal(ks[7], (C, F * len(WINDOW_SIZES)), jnp.float32) * 0.1,
        "fc_b": jax.random.normal(ks[8], (C,), jnp.float32) * 0.1,
    }
    tokens = jax.random.randint(ks[9], (B, S), 0, VOCAB)

    prepared = prepare_params(params)                 # one-time weight re-layout
    out = jax.block_until_ready(cnn_text_classifier(tokens, prepared))
    ref = jax.block_until_ready(reference(tokens, params))
    assert out.shape == (B, B - 1), out.shape
    assert jnp.allclose(out, ref, atol=1e-4, rtol=1e-4), (out, ref)
    print("KERNEL_OK")
</pallas_src>

<mosaic_0001>
module attributes {stable_mosaic.version = 11 : i64} {
  func.func @_cnn_text_kernel(%arg0: memref<24x1500xf32, #tpu.memory_space<vmem>>, %arg1: memref<24x24xf32, #tpu.memory_space<vmem>>, %arg2: memref<24x1500xf32, #tpu.memory_space<vmem>>, %arg3: memref<1x24xf32, #tpu.memory_space<vmem>>, %arg4: memref<24x4xf32, #tpu.memory_space<vmem>>, %arg5: memref<1x4xf32, #tpu.memory_space<vmem>>, %arg6: memref<2x2xf32, #tpu.memory_space<vmem>>, %arg7: memref<2x24xf32, #tpu.memory_space<vmem>>) attributes {dimension_semantics = [], scalar_prefetch = 0 : i64, scratch_operands = 1 : i64, tpu.core_type = #tpu.core_type<tc>} {
    %c0 = arith.constant 0 : index
    %c0_0 = arith.constant 0 : index
    %0 = vector.load %arg0[%c0, %c0_0] : memref<24x1500xf32, #tpu.memory_space<vmem>>, vector<24x1500xf32>
    %c0_1 = arith.constant 0 : index
    %c0_2 = arith.constant 0 : index
    %1 = vector.load %arg2[%c0_1, %c0_2] : memref<24x1500xf32, #tpu.memory_space<vmem>>, vector<24x1500xf32>
    %cst = arith.constant dense<0.000000e+00> : vector<24x24xf32>
    %2 = tpu.matmul %0, %1, %cst {dimension_numbers = #tpu.dot_dimension_numbers<[1], [1], [0], [0], [0, 0, 1, 0], [], []>} : vector<24x1500xf32>, vector<24x1500xf32>, vector<24x24xf32> -> vector<24x24xf32>
    %c0_3 = arith.constant 0 : index
    %c0_4 = arith.constant 0 : index
    %3 = vector.load %arg3[%c0_3, %c0_4] : memref<1x24xf32, #tpu.memory_space<vmem>>, vector<1x24xf32>
    %4 = vector.broadcast %3 : vector<1x24xf32> to vector<24x24xf32>
    %5 = arith.addf %2, %4 : vector<24x24xf32>
    %cst_5 = arith.constant 0.000000e+00 : f32
    %6 = vector.broadcast %cst_5 : f32 to vector<24x24xf32>
    %7 = arith.maximumf %5, %6 : vector<24x24xf32>
    %c0_6 = arith.constant 0 : index
    %c0_7 = arith.constant 0 : index
    %8 = vector.load %arg1[%c0_6, %c0_7] : memref<24x24xf32, #tpu.memory_space<vmem>>, vector<24x24xf32>
    %9 = arith.mulf %7, %8 : vector<24x24xf32>
    %10 = vector.extract_strided_slice %9 {offsets = [0, 0], sizes = [12, 24], strides = [1, 1]} : vector<24x24xf32> to vector<12x24xf32>
    %cst_8 = arith.constant dense<0xFF800000> : vector<24xf32>
    %11 = vector.multi_reduction <maximumf>, %10, %cst_8 [0] : vector<12x24xf32> to vector<24xf32>
    %12 = vector.shape_cast %11 : vector<24xf32> to vector<1x24xf32>
    %c0_9 = arith.constant 0 : index
    %c0_10 = arith.constant 0 : index
    %13 = vector.load %arg7[%c0_9, %c0_10] : memref<2x24xf32, #tpu.memory_space<vmem>>, vector<1x24xf32>
    tpu.vector_store %arg7[%c0_9, %c0_10], %12 {strides = array<i32>} : memref<2x24xf32, #tpu.memory_space<vmem>>, vector<1x24xf32>,
    %14 = vector.extract_strided_slice %9 {offsets = [12, 0], sizes = [12, 24], strides = [1, 1]} : vector<24x24xf32> to vector<12x24xf32>
    %cst_11 = arith.constant dense<0xFF800000> : vector<24xf32>
    %15 = vector.multi_reduction <maximumf>, %14, %cst_11 [0] : vector<12x24xf32> to vector<24xf32>
    %16 = vector.shape_cast %15 : vector<24xf32> to vector<1x24xf32>
    %c1 = arith.constant 1 : index
    %c0_12 = arith.constant 0 : index
    %17 = vector.load %arg7[%c1, %c0_12] : memref<2x24xf32, #tpu.memory_space<vmem>>, vector<1x24xf32>
    tpu.vector_store %arg7[%c1, %c0_12], %16 {strides = array<i32>} : memref<2x24xf32, #tpu.memory_space<vmem>>, vector<1x24xf32>,
    %c0_13 = arith.constant 0 : index
    %c0_14 = arith.constant 0 : index
    %18 = vector.load %arg7[%c0_13, %c0_14] : memref<2x24xf32, #tpu.memory_space<vmem>>, vector<2x24xf32>
    %c0_15 = arith.constant 0 : index
    %c0_16 = arith.constant 0 : index
    %19 = vector.load %arg4[%c0_15, %c0_16] : memref<24x4xf32, #tpu.memory_space<vmem>>, vector<24x4xf32>
    %cst_17 = arith.constant dense<0.000000e+00> : vector<2x4xf32>
    %20 = tpu.matmul %18, %19, %cst_17 {dimension_numbers = #tpu.dot_dimension_numbers<[1], [0], [0], [1], [0, 0, 1, 1], [], []>} : vector<2x24xf32>, vector<24x4xf32>, vector<2x4xf32> -> vector<2x4xf32>
    %c0_18 = arith.constant 0 : index
    %c0_19 = arith.constant 0 : index
    %21 = vector.load %arg5[%c0_18, %c0_19] : memref<1x4xf32, #tpu.memory_space<vmem>>, vector<1x4xf32>
    %22 = vector.broadcast %21 : vector<1x4xf32> to vector<2x4xf32>
    %23 = arith.addf %20, %22 : vector<2x4xf32>
    %cst_20 = arith.constant dense<0.000000e+00> : vector<2x2xf32>
    %24 = tpu.matmul %23, %23, %cst_20 {dimension_numbers = #tpu.dot_dimension_numbers<[1], [1], [0], [0], [0, 0, 1, 0], [], []>} : vector<2x4xf32>, vector<2x4xf32>, vector<2x2xf32> -> vector<2x2xf32>
    %25 = arith.mulf %23, %23 : vector<2x4xf32>
    %cst_21 = arith.constant dense<0.000000e+00> : vector<2xf32>
    %26 = vector.multi_reduction <add>, %25, %cst_21 [1] : vector<2x4xf32> to vector<2xf32>
    %27 = vector.shape_cast %26 : vector<2xf32> to vector<2x1xf32>
    %28 = math.sqrt %27 : vector<2x1xf32>
    %cst_22 = arith.constant dense<0.000000e+00> : vector<2x2xf32>
    %29 = tpu.matmul %28, %28, %cst_22 {dimension_numbers = #tpu.dot_dimension_numbers<[1], [1], [0], [0], [0, 0, 1, 0], [], []>} : vector<2x1xf32>, vector<2x1xf32>, vector<2x2xf32> -> vector<2x2xf32>
    %cst_23 = arith.constant 9.99999993E-9 : f32
    %30 = vector.broadcast %cst_23 : f32 to vector<2x2xf32>
    %31 = arith.maximumf %29, %30 : vector<2x2xf32>
    %32 = arith.divf %24, %31 : vector<2x2xf32>
    %c0_24 = arith.constant 0 : index
    %c0_25 = arith.constant 0 : index
    %33 = vector.load %arg6[%c0_24, %c0_25] : memref<2x2xf32, #tpu.memory_space<vmem>>, vector<2x2xf32>
    tpu.vector_store %arg6[%c0_24, %c0_25], %32 {strides = array<i32>} : memref<2x2xf32, #tpu.memory_space<vmem>>, vector<2x2xf32>,
    return
  }
}

</mosaic_0001>

<bundles_post_ra>
// kernel: tile.9
= control target key start
LH: loop header
LB: loop body
LE: loop exit
PB: predicated region body
PF: predicated region fallthrough
CT: control target
= control target key end

     0   :  { %vm3_vm0 = vcmask 195584   ;;  %s60_s0 = inlined_call_operand.vmem [shape: f32[2,12,24], index: 0, kind: input, shape index: {}]   ;;  %s61_s1 = inlined_call_operand.vmem [shape: f32[24,24], index: 1, kind: output, shape index: {}]  }
   0x1   :  { %v2_v0 = vld [vmem:[%s60_s0] sm:$0xff]   ;;  %v20_v1 = vld [vmem:[%s60_s0 + $0x8] sm:$0xf]   ;;  %v22_v2 = vld [vmem:[%s60_s0 + $0x10] sm:$0xff]  }
   0x2   :  { %4 = vst.msk [vmem:[%s61_s1] sm:$0xff] %vm3_vm0, %v2_v0   ;;  %21 = vst.msk [vmem:[%s61_s1 + $0x8] sm:$0xf] %vm3_vm0, %v20_v1   ;;  %v24_v3 = vld [vmem:[%s60_s0 + $0x18] sm:$0xf]  }
   0x3   :  { %23 = vst.msk [vmem:[%s61_s1 + $0xc] sm:$0xff] %vm3_vm0, %v22_v2   ;;  %25 = vst.msk [vmem:[%s61_s1 + $0x14] sm:$0xf] %vm3_vm0, %v24_v3  }

// kernel: cnn_text_classifier.1
= control target key start
LH: loop header
LB: loop body
LE: loop exit
PB: predicated region body
PF: predicated region fallthrough
CT: control target
= control target key end

     0   :  { %vm102_vm0 = vcmask 752640   ;;  %vm995_vm2 = vmmov 0   ;;  %vm623_vm3 = vcmask 195588   ;;  %vm610_vm4 = vcmask 195584   ;;  %s1302_s2 = inlined_call_operand.vmem [shape: f32[24,1500], index: 2, kind: input, shape index: {}]   ;;  %s1303_s0 = inlined_call_operand.vmem [shape: f32[24,1500], index: 0, kind: input, shape index: {}]   ;;  %s1304_s4 = inlined_call_operand.vmem [shape: f32[24,4], index: 4, kind: input, shape index: {}]   ;;  %s1305_s3 = inlined_call_operand.vmem [shape: f32[1,24], index: 3, kind: input, shape index: {}]   ;;  %s1306_s1 = inlined_call_operand.vmem [shape: f32[24,24], index: 1, kind: input, shape index: {}]   ;;  %s1307_s5 = inlined_call_operand.vmem [shape: f32[1,4], index: 5, kind: input, shape index: {}]   ;;  %s1308_s6 = inlined_call_operand.vmem [shape: f32[2,2], index: 6, kind: output, shape index: {}]  }
   0x1   :  { %v60_v0 = vld [vmem:[%s1302_s2 + $0x8] sm:$0xff]  ;;  %v59_v5 = vld [vmem:[%s1302_s2] sm:$0xff]  ;;  %v62_v16 = vld [vmem:[%s1302_s2 + $0x18] sm:$0xff]  ;;  %vm612_vm5 = vcmask 191488   ;;  %vm621_vm6 = vcmask 188416   ;;  %vm718_vm7 = vcmask 31744  }
   0x2   :  { %v72_v1 = vld [vmem:[%s1302_s2 + $0x68] sm:$0xff]  ;;  %v71_v6 = vld [vmem:[%s1302_s2 + $0x60] sm:$0xff]  ;;  %v74_v17 = vld [vmem:[%s1302_s2 + $0x78] sm:$0xff]  ;;  %vm793_vm8 = vcmask 25600   ;;  %vm804_vm10 = vcmask 7168   ;;  %vm881_vm12 = vcmask 9216  }
   0x3   :  { %v64_v2 = vld [vmem:[%s1302_s2 + $0x28] sm:$0xff]  ;;  %v927_v3 = vpack.c.bf16 %v72_v1, %v60_v0  ;;  %v929_v8 = vpack.c.bf16 %v71_v6, %v59_v5  ;;  %v63_v9 = vld [vmem:[%s1302_s2 + $0x20] sm:$0xff]  ;;  %v66_v18 = vld [vmem:[%s1302_s2 + $0x38] sm:$0xff]  ;;  %v931_v21 = vpack.c.bf16 %v74_v17, %v62_v16 }
   0x4   :  { %v76_v4 = vld [vmem:[%s1302_s2 + $0x88] sm:$0xff]  ;;  %v75_v10 = vld [vmem:[%s1302_s2 + $0x80] sm:$0xff]  ;;  %v78_v19 = vld [vmem:[%s1302_s2 + $0x98] sm:$0xff] }
   0x5   :  { %v935_v7 = vpack.c.bf16 %v76_v4, %v64_v2  ;;  %v84_v11 = vld [vmem:[%s1302_s2 + $0xc8] sm:$0xff]  ;;  %928 = vmatprep.subr.bf16.mxu1 %v927_v3  ;;  %v937_v12 = vpack.c.bf16 %v75_v10, %v63_v9  ;;  %v83_v20 = vld [vmem:[%s1302_s2 + $0xc0] sm:$0xff]  ;;  %v61_v22 = vld [vmem:[%s1302_s2 + $0x10] sm:$0xff]  ;;  %v939_v25 = vpack.c.bf16 %v78_v19, %v66_v18 }
   0x6   :  { %v88_v13 = vld [vmem:[%s1302_s2 + $0xe8] sm:$0xff]  ;;  %930 = vmatpush1.bf16.xpose.msra.mxu1 %v929_v8  ;;  %v73_v23 = vld [vmem:[%s1302_s2 + $0x70] sm:$0xff]  ;;  %v87_v24 = vld [vmem:[%s1302_s2 + $0xe0] sm:$0xff] }
   0x7   :  { %936 = vmatprep.subr.bf16.mxu0 %v935_v7  ;;  %v24_v14 = vld [vmem:[%s1303_s0 + $0x8] sm:$0xff]  ;;  %125 = vmatprep.subr.mxu1 %v84_v11  ;;  %v65_v26 = vld [vmem:[%s1302_s2 + $0x30] sm:$0xff]  ;;  %v23_v28 = vld [vmem:[%s1303_s0] sm:$0xff]  ;;  %v933_v29 = vpack.c.bf16 %v73_v23, %v61_v22  ;;  %v994_v23 = vmov 0.0|0.0  }
   0x8   :  { %v28_v15 = vld [vmem:[%s1303_s0 + $0x28] sm:$0xff]  ;;  %938 = vmatpush1.bf16.xpose.msra.mxu0 %v937_v12  ;;  %185 = vmatprep.mubr.f32.mxu1 %v24_v14  ;;  %v77_v27 = vld [vmem:[%s1302_s2 + $0x90] sm:$0xff]  ;;  %v27_v30 = vld [vmem:[%s1303_s0 + $0x20] sm:$0xff] }
   0x9   :  { %285 = vmatprep.subr.mxu0 %v88_v13  ;;  %345 = vmatprep.mubr.f32.mxu0 %v28_v15  ;;  %v941_v31 = vpack.c.bf16 %v77_v27, %v65_v26  ;;  %v36_v32 = vld [vmem:[%s1303_s0 + $0x68] sm:$0xff]  ;;  %v86_v34 = vld [vmem:[%s1302_s2 + $0xd8] sm:$0xff]  ;;  %v35_v35 = vld [vmem:[%s1303_s0 + $0x60] sm:$0xff] }
   0xa   :  { %v40_v33 = vld [vmem:[%s1303_s0 + $0x88] sm:$0xff]  ;;  %v90_v36 = vld [vmem:[%s1302_s2 + $0xf8] sm:$0xff]  ;;  %v39_v37 = vld [vmem:[%s1303_s0 + $0x80] sm:$0xff] }
   0xb   :  { %v48_v38 = vld [vmem:[%s1303_s0 + $0xc8] sm:$0xff]  ;;  %v47_v42 = vld [vmem:[%s1303_s0 + $0xc0] sm:$0xff]  ;;  %v70_v43 = vld [vmem:[%s1302_s2 + $0x58] sm:$0xff] }
   0xc   :  { %v52_v39 = vld [vmem:[%s1303_s0 + $0xe8] sm:$0xff]  ;;  %v82_v44 = vld [vmem:[%s1302_s2 + $0xb8] sm:$0xff]  ;;  %v51_v45 = vld [vmem:[%s1303_s0 + $0xe0] sm:$0xff] }
   0xd   :  { %v68_v40 = vld [vmem:[%s1302_s2 + $0x48] sm:$0xff]  ;;  %v85_v46 = vld [vmem:[%s1302_s2 + $0xd0] sm:$0xff]  ;;  %v26_v48 = vld [vmem:[%s1303_s0 + $0x18] sm:$0xff]  ;;  %v947_v53 = vpack.c.bf16 %v82_v44, %v70_v43 }
   0xe   :  { %126 = vmatpush1.xpose.msra.mxu1 %v83_v20  ;;  %v80_v41 = vld [vmem:[%s1302_s2 + $0xa8] sm:$0xff]  ;;  %v89_v47 = vld [vmem:[%s1302_s2 + $0xf0] sm:$0xff]  ;;  %v67_v50 = vld [vmem:[%s1302_s2 + $0x40] sm:$0xff] }
   0xf   :  { %932 = vmatprep.subr.bf16.mxu1 %v931_v21  ;;  %v943_v49 = vpack.c.bf16 %v80_v41, %v68_v40  ;;  %v79_v51 = vld [vmem:[%s1302_s2 + $0xa0] sm:$0xff]  ;;  %v30_v52 = vld [vmem:[%s1303_s0 + $0x38] sm:$0xff]  ;;  %v69_v54 = vld [vmem:[%s1302_s2 + $0x50] sm:$0xff] }
  0x10   :  { %286 = vmatpush1.xpose.msra.mxu0 %v87_v24  ;;  %v81_v55 = vld [vmem:[%s1302_s2 + $0xb0] sm:$0xff]  ;;  %vm1175_vm1 = vmpackc.low %vm102_vm0, %vm102_vm0  ;;  %v945_v59 = vpack.c.bf16 %v79_v51, %v67_v50  ;;  %v38_v60 = vld [vmem:[%s1303_s0 + $0x78] sm:$0xff] }
  0x11   :  { %940 = vmatprep.subr.bf16.mxu0 %v939_v25  ;;  %186 = vmatmul.mubr.f32.vlgmr.msra.gmra.mrb[0].mxu1 %v23_v28  ;;  %v25_v56 = vld [vmem:[%s1303_s0 + $0x10] sm:$0xff]  ;;  %v42_v61 = vld [vmem:[%s1303_s0 + $0x98] sm:$0xff]  ;;  %v950_v62 = vpack.c.bf16 %v81_v55, %v69_v54  ;;  %v92_v63 = vld [vmem:[%s1302_s2 + $0x108] sm:$0xff]  ;;  %v996_v25 = vmov 0.0  }
  0x12   :  { %934 = vmatpush1.bf16.xpose.msra.mxu1 %v933_v29  ;;  %190 = vmatprep.mubr.f32.mxu1 %v36_v32  ;;  %v29_v58 = vld [vmem:[%s1303_s0 + $0x30] sm:$0xff]  ;;  %v94_v1 = vld [vmem:[%s1302_s2 + $0x118] sm:$0xff]  ;;  %v91_v8 = vld [vmem:[%s1302_s2 + $0x100] sm:$0xff] }
  0x13   :  { %346 = vmatmul.mubr.f32.vlgmr.msra.gmra.mrb[0].mxu0 %v27_v30  ;;  %205 = vmatprep.subr.mxu1 %v86_v34  ;;  %v37_v0 = vld [vmem:[%s1303_s0 + $0x70] sm:$0xff]  ;;  %v50_v3 = vld [vmem:[%s1303_s0 + $0xd8] sm:$0xff]  ;;  %v32_v9 = vld [vmem:[%s1303_s0 + $0x48] sm:$0xff] }
  0x14   :  { %942 = vmatpush1.bf16.xpose.msra.mxu0 %v941_v31  ;;  %350 = vmatprep.mubr.f32.mxu0 %v40_v33  ;;  %v41_v2 = vld [vmem:[%s1303_s0 + $0x90] sm:$0xff]  ;;  %v54_v4 = vld [vmem:[%s1303_s0 + $0xf8] sm:$0xff]  ;;  %v31_v11 = vld [vmem:[%s1303_s0 + $0x40] sm:$0xff] }
  0x15   :  { %191 = vmatmul.mubr.f32.gmra.mrb[2].mxu1 %v35_v35  ;;  %365 = vmatprep.subr.mxu0 %v90_v36  ;;  %v49_v5 = vld [vmem:[%s1303_s0 + $0xd0] sm:$0xff]  ;;  %v46_v7 = vld [vmem:[%s1303_s0 + $0xb8] sm:$0xff]  ;;  %v44_v12 = vld [vmem:[%s1303_s0 + $0xa8] sm:$0xff] }
  0x16   :  { %195 = vmatprep.mubr.f32.mxu1 %v48_v38  ;;  %v53_v6 = vld [vmem:[%s1303_s0 + $0xf0] sm:$0xff]  ;;  %v58_v14 = vld [vmem:[%s1303_s0 + $0x118] sm:$0xff]  ;;  %v43_v15 = vld [vmem:[%s1303_s0 + $0xa0] sm:$0xff] }
  0x17   :  { %351 = vmatmul.mubr.f32.gmra.mrb[2].mxu0 %v39_v37  ;;  %v93_v10 = vld [vmem:[%s1302_s2 + $0x110] sm:$0xff]  ;;  %v56_v16 = vld [vmem:[%s1303_s0 + $0x108] sm:$0xff]  ;;  %v55_v18 = vld [vmem:[%s1303_s0 + $0x100] sm:$0xff] }
  0x18   :  { %355 = vmatprep.mubr.f32.mxu0 %v52_v39  ;;  %v45_v13 = vld [vmem:[%s1303_s0 + $0xb0] sm:$0xff]  ;;  %v34_v19 = vld [vmem:[%s1303_s0 + $0x58] sm:$0xff]  ;;  %v635_v21 = vld [vmem:[%s1304_s4] sm:$0xff] }
  0x19   :  { %196 = vmatmul.mubr.f32.gmra.mrb[4].mxu1 %v47_v42  ;;  %v57_v17 = vld [vmem:[%s1303_s0 + $0x110] sm:$0xff]  ;;  %v636_v22 = vld [vmem:[%s1304_s4 + $0x8] sm:$0xff]  ;;  %v887_v33 = vld [vmem:[%s1305_s3] ss:$0 sm:$0xff] }
  0x1a   :  { %206 = vmatpush1.xpose.msra.mxu1 %v85_v46  ;;  %265 = vmatprep.mubr.f32.mxu1 %v26_v48  ;;  %v33_v20 = vld [vmem:[%s1303_s0 + $0x50] sm:$0xff]  ;;  %v953_v24 = vpack.c.bf16 %v636_v22, %v635_v21  ;;  %v605_v48 = vld [vmem:[%s1306_s1 + $0x8] sm:$0xff]  ;;  %v604_v57 = vld [vmem:[%s1306_s1] sm:$0xff] }
  0x1b   :  { %356 = vmatmul.mubr.f32.gmra.mrb[4].mxu0 %v51_v45  ;;  %955 = vmatprep.subr.msk.bf16.mxu1 %vm1175_vm1, %v947_v53  ;;  %v637_v26 = vld [vmem:[%s1304_s4 + $0x10] sm:$0xff] }
  0x1c   :  { %366 = vmatpush1.xpose.msra.mxu0 %v89_v47  ;;  %425 = vmatprep.mubr.f32.mxu0 %v30_v52  ;;  %v606_v51 = vld [vmem:[%s1306_s1 + $0x10] sm:$0xff] }
  0x1d   :  { %944 = vmatprep.subr.bf16.mxu0 %v943_v49  ;;  %266 = vmatmul.mubr.f32.vlgmr.msra.gmra.mrb[0].mxu1 %v25_v56 }
  0x1e   :  { %270 = vmatprep.mubr.f32.mxu1 %v38_v60  ;;  %957 = vmatpush1.bf16.xpose.msra.mxu1 %v950_v62 }
  0x1f   :  { %426 = vmatmul.mubr.f32.vlgmr.msra.gmra.mrb[0].mxu0 %v29_v58  ;;  %956 = vmatprep.subr.msk.mxu1 %vm102_vm0, %v94_v1 }
  0x20   :  { %946 = vmatpush1.bf16.xpose.msra.mxu0 %v945_v59  ;;  %430 = vmatprep.mubr.f32.mxu0 %v42_v61 }
  0x21   :  { %445 = vmatprep.subr.mxu0 %v92_v63  ;;  %271 = vmatmul.mubr.f32.gmra.mrb[2].mxu1 %v37_v0 }
  0x22   :  { %275 = vmatprep.mubr.f32.mxu1 %v50_v3 }
  0x23   :  { %431 = vmatmul.mubr.f32.gmra.mrb[2].mxu0 %v41_v2 }
  0x24   :  { %435 = vmatprep.mubr.f32.mxu0 %v54_v4 }
  0x25   :  { %276 = vmatmul.mubr.f32.gmra.mrb[4].mxu1 %v49_v5 }
  0x26   :  { %892 = vmatprep.mubr.msk.f32.mxu1 %vm102_vm0, %v46_v7  ;;  %958 = vmatpush1.xpose.msra.mxu1 %v93_v10 }
  0x27   :  { %436 = vmatmul.mubr.f32.gmra.mrb[4].mxu0 %v53_v6  ;;  %952 = vmatprep.subr.bf16.mxu1 %v994_v23 }
  0x28   :  { %446 = vmatpush1.xpose.msra.mxu0 %v91_v8  ;;  %505 = vmatprep.mubr.f32.mxu0 %v32_v9 }
  0x29   :  { %949 = vmatprep.subr.msk.bf16.mxu0 %vm1175_vm1, %v947_v53  ;;  %591 = vmatmul.mubr.f32.vlgmr.msra.gmra.mrb[6].mxu1 %v45_v13 }
  0x2a   :  { %893 = vmatprep.mubr.msk.f32.mxu1 %vm102_vm0, %v58_v14  ;;  %954 = vmatpush3.bf16.msra.mxu1 %v953_v24 }
  0x2b   :  { %506 = vmatmul.mubr.f32.vlgmr.msra.gmra.mrb[0].mxu0 %v31_v11  ;;  %912 = vmatprep.subr.mxu1 %v996_v25 }
  0x2c   :  { %951 = vmatpush1.bf16.xpose.msra.mxu0 %v950_v62  ;;  %510 = vmatprep.mubr.f32.mxu0 %v44_v12 }
  0x2d   :  { %890 = vmatprep.subr.msk.mxu0 %vm102_vm0, %v94_v1  ;;  %596 = vmatmul.mubr.f32.gmra.mrb[8].mxu1 %v57_v17 }
  0x2e   :  { %914 = vmatprep.mubr.msk.f32.mxu1 %vm995_vm2, %v996_v25  ;;  %913 = vmatpush3.msra.mxu1 %v637_v26 }
  0x2f   :  { %511 = vmatmul.mubr.f32.gmra.mrb[2].mxu0 %v43_v15  ;;  %917 = vmatprep.subr.mxu1 %v996_v25 }
  0x30   :  { %515 = vmatprep.mubr.f32.mxu0 %v56_v16  ;;  %v894_v16 = vld [vmem:[%s1307_s5] ss:$0 sm:$0xff] }
  0x33   :  { %516 = vmatmul.mubr.f32.gmra.mrb[4].mxu0 %v55_v18 }
  0x34   :  { %526 = vmatpush1.xpose.msra.mxu0 %v93_v10  ;;  %891 = vmatprep.mubr.msk.f32.mxu0 %vm102_vm0, %v34_v19 }
  0x37   :  { %586 = vmatmul.mubr.f32.vlgmr.msra.gmra.mrb[0].mxu0 %v33_v20 }
  0xf0   :  { %v267_v27 = vpop.f32.mrb[0].mxu1 }
  0xf1   :  { %v269_v28 = vpop.f32.mrb[1].mxu1  ;;  %v959_v49 = vadd.f32 %v887_v33, %v267_v27 }
  0xf4   :  { %v272_v29 = vpop.f32.mrb[2].mxu1 }
  0xf5   :  { %v274_v30 = vpop.f32.mrb[3].mxu1  ;;  %v961_v35 = vadd.f32 %v887_v33, %v272_v29 }
  0xf8   :  { %v277_v31 = vpop.f32.mrb[4].mxu1 }
  0xf9   :  { %v279_v32 = vpop.f32.mrb[5].mxu1  ;;  %v964_v41 = vadd.f32 %v887_v33, %v277_v31 }
  0xfc   :  { %v592_v34 = vpop.f32.mrb[6].mxu1 }
  0xfd   :  { %v594_v36 = vpop.f32.mrb[7].mxu1 }
 0x100   :  { %v597_v40 = vpop.f32.mrb[8].mxu1 }
 0x101   :  { %v599_v43 = vpop.f32.mrb[9].mxu1 }
 0x102   :  { %v512_v37 = vpop.f32.mrb[2].mxu0 }
 0x103   :  { %v962_v38 = vadd.f32 %v961_v35, %v512_v37  ;;  %v514_v39 = vpop.f32.mrb[3].mxu0 }
 0x105   :  { %v963_v42 = vadd.f32 %v962_v38, %v592_v34 }
 0x106   :  { %v517_v44 = vpop.f32.mrb[4].mxu0 }
 0x107   :  { %v602_v45 = vmax.f32 %v963_v42, 0.0  ;;  %v965_v46 = vadd.f32 %v964_v41, %v517_v44  ;;  %v519_v47 = vpop.f32.mrb[5].mxu0 }
 0x109   :  { %v966_v50 = vadd.f32 %v965_v46, %v597_v40  ;;  %v608_v53 = vmul.f32 %v605_v48, %v602_v45 }
 0x10a   :  { %v587_v52 = vpop.f32.mrb[0].mxu0 }
 0x10b   :  { %v603_v54 = vmax.f32 %v966_v50, 0.0  ;;  %v960_v55 = vadd.f32 %v959_v49, %v587_v52  ;;  %v589_v56 = vpop.f32.mrb[1].mxu0  ;;  %v624_v60 = vsel %vm623_vm3, %v608_v53, -inf  ;;  %v613_v0 = vsel %vm612_vm5, %v608_v53, -inf }
 0x10d   :  { %v609_v58 = vmul.f32 %v606_v51, %v603_v54  ;;  %v601_v59 = vmax.f32 %v960_v55, 0.0 }
 0x10f   :  { %v625_v61 = vsel %vm610_vm4, %v609_v58, -inf  ;;  %v607_v62 = vmul.f32 %v604_v57, %v601_v59 }
 0x110   :  { %v626_v63 = vmax.f32 %v624_v60, %v625_v61 }
 0x111   :  { %v611_v1 = vsel %vm610_vm4, %v607_v62, -inf }
 0x112   :  { %v627_v2 = vrot.slane %v626_v63, 4  ;;  %v614_v3 = vmax.f32 %v611_v1, %v613_v0 }
 0x114   :  { %v628_v4 = vmax.f32 %v626_v63, %v627_v2  ;;  %v615_v5 = vrot.slane %v614_v3, 4 }
 0x116   :  { %v629_v6 = vrot.slane %v628_v4, 2  ;;  %v616_v7 = vmax.f32 %v614_v3, %v615_v5 }
 0x118   :  { %v630_v8 = vmax.f32 %v628_v4, %v629_v6  ;;  %v617_v9 = vrot.slane %v616_v7, 2 }
 0x11a   :  { %v631_v10 = vrot.slane %v630_v8, 1  ;;  %v618_v11 = vmax.f32 %v616_v7, %v617_v9 }
 0x11c   :  { %v632_v12 = vmax.f32 %v630_v8, %v631_v10  ;;  %v619_v13 = vrot.slane %v618_v11, 1 }
 0x11e   :  { %633 = vst.msk [vmem:[#allocation2 + $0x1] sm:$0x1] %vm621_vm6, %v632_v12  ;;  %v620_v14 = vmax.f32 %v618_v11, %v619_v13 }
 0x120   :  { %622 = vst.msk [vmem:[#allocation2] sm:$0x1] %vm621_vm6, %v620_v14 }
 0x127   :  { %v634_v15 = vld [vmem:[#allocation2] sm:$0x3] }
 0x128   :  { %915 = vmatmul.mubr.msk.f32.vlgmr.msra.gmra.mrb[10].mxu1 %vm610_vm4, %v634_v15 }
 0x129   :  { %919 = vmatprep.mubr.msk.f32.mxu1 %vm995_vm2, %v996_v25 }
 0x1fb   :  { %v714_v17 = vpop.f32.mrb[10].mxu1 }
 0x1fc   :  { %v715_v18 = vadd.f32 %v894_v16, %v714_v17  ;;  %v916_v19 = vpop.f32.mrb[11].mxu1 }
 0x1fe   :  { %918 = vmatpush3.xpose.msk.msra.mxu1 %vm718_vm7, %v715_v18  ;;  %v792_v20 = vmul.f32 %v715_v18, %v715_v18 }
 0x1ff   :  { %922 = vmatprep.subr.mxu1 %v996_v25 }
 0x200   :  { %v794_v21 = vsel %vm793_vm8, %v792_v20, 0.0 }
 0x201   :  { %920 = vmatmul.mubr.msk.f32.vlgmr.msra.gmra.mrb[12].mxu1 %vm718_vm7, %v715_v18  ;;  %795 = vadd.xlane.f32.xlu0 %v794_v21 }
 0x202   :  { %924 = vmatprep.mubr.msk.f32.mxu1 %vm995_vm2, %v996_v25 }
 0x28e   :  { %v796_v22 = vpop.xlane.xlu0 %795 }
 0x28f   :  { %990 = vrsqrt.f32 %v796_v22  ;;  %vm799_vm9 = vcmp.eq.f32.partialorder %v796_v22, inf  ;;  %v802_v26 = vand.u32 2147483648, %v796_v22  ;;  %vm801_vm11 = vcmp.eq.f32.partialorder %v796_v22, 0.0 }
 0x299   :  { %v991_v23 = vpop.eup %990 }
 0x29a   :  { %v798_v24 = vmul.f32 %v991_v23, %v796_v22 }
 0x29c   :  { %v800_v27 = vsel %vm799_vm9, %v796_v22, %v798_v24 }
 0x29d   :  { %v803_v28 = vsel %vm801_vm11, %v802_v26, %v800_v27 }
 0x29e   :  { %923 = vmatpush3.xpose.msk.msra.mxu1 %vm804_vm10, %v803_v28 }
 0x2a1   :  { %925 = vmatmul.mubr.msk.f32.vlgmr.msra.gmra.mrb[14].mxu1 %vm804_vm10, %v803_v28 }
 0x2d4   :  { %v788_v29 = vpop.f32.mrb[12].mxu1 }
 0x2d5   :  { %v921_v30 = vpop.f32.mrb[13].mxu1 }
 0x374   :  { %v874_v31 = vpop.f32.mrb[14].mxu1 }
 0x375   :  { %v878_v32 = vmax.f32 %v874_v31, 1e-08  ;;  %v926_v33 = vpop.f32.mrb[15].mxu1 }
 0x377   :  { %992 = vrcp.f32 %v878_v32 }
 0x381   :  { %v993_v34 = vpop.eup %992 }
 0x382   :  { %v880_v25 = vmul.f32 %v993_v34, %v788_v29 }
 0x384   :  { %882 = vst.msk [vmem:[%s1308_s6] sm:$0x3] %vm881_vm12, %v880_v25 }

</bundles_post_ra>
